<compile_context>
chip_gen: v7x
topology: tpu7x:2x2x1
jax: 0.10.0
libtpu: 0.0.40
codegen_flags: <defaults>
</compile_context>

<pallas_src>
import math

import jax
import jax.numpy as jnp
import numpy as np
from jax.experimental import pallas as pl
from jax.experimental.pallas import tpu as pltpu


_PARALLEL = getattr(pltpu, "PARALLEL", "parallel")
_ARBITRARY = getattr(pltpu, "ARBITRARY", "arbitrary")
_CORE_PARALLEL = getattr(pltpu, "CORE_PARALLEL", _PARALLEL)


def _tpu_topology():
    """Best-effort (TensorCore count, VMEM bytes). Falls back to (1, None)."""
    num_cores, vmem_bytes = 1, None
    try:
        info = pltpu.get_tpu_info()
    except Exception:
        return num_cores, vmem_bytes
    for name in ("num_cores", "core_count", "num_tensorcores", "tensorcore_count",
                 "cores_per_chip"):
        v = getattr(info, name, None)
        if isinstance(v, int) and v > 0:
            num_cores = v
            break
    for name in ("vmem_capacity_bytes", "vmem_size_bytes", "vmem_bytes"):
        v = getattr(info, name, None)
        if isinstance(v, int) and v > 0:
            vmem_bytes = v
            break
    return num_cores, vmem_bytes


def _make_kernel(C, SA, fold_groups, has_pad):
    """Build the per-block statistics kernel.

    Block shapes seen by the kernel:
      pred_ref  : (B, C, ST, 128)  logits in native dtype
      tgt_ref   : (B, ST, 128)     int32 class indices (-1 marks padded pixels)
      inter_ref : (1, C, SA, 128)  f32 resident accumulator (softmax * onehot)
      zsum_ref  : (1, C, SA, 128)  f32 resident accumulator (softmax^2)
      ce_ref    : (1, 1, SA, 128)  f32 resident accumulator (per-pixel CE)
    """

    def kernel(pred_ref, tgt_ref, inter_ref, zsum_ref, ce_ref):
        first = jnp.logical_and(pl.program_id(1) == 0, pl.program_id(2) == 0)

        @pl.when(first)
        def _init():
            inter_ref[...] = jnp.zeros_like(inter_ref)
            zsum_ref[...] = jnp.zeros_like(zsum_ref)
            ce_ref[...] = jnp.zeros_like(ce_ref)

        x = pred_ref[...].astype(jnp.float32)   # (B, C, ST, 128)
        tgt = tgt_ref[...]                      # (B, ST, 128) int32
        B, _, ST, L = x.shape

        def fold(v):                            # (B, ST, L) -> (SA, L) elementwise adds
            return v.reshape(B, fold_groups, SA, L).sum(axis=(0, 1))

        # Numerically stable softmax over the small leading class axis (unrolled,
        # pure VPU work — no cross-lane/sublane reductions).
        m = x[:, 0]
        for i in range(1, C):
            m = jnp.maximum(m, x[:, i])
        exps = [jnp.exp(x[:, i] - m) for i in range(C)]
        s = exps[0]
        for i in range(1, C):
            s = s + exps[i]
        inv = 1.0 / s                           # single exact per-pixel reciprocal
        lse = m + jnp.log(s)

        picked = jnp.zeros_like(m)
        for i in range(C):
            oh = tgt == i                       # onehot slice: compare-with-constant
            p_i = exps[i] * inv                 # softmax prob of class i
            picked = jnp.where(oh, x[:, i], picked)
            inter_ref[0, i, :, :] += fold(jnp.where(oh, p_i, 0.0))
            zsum_ref[0, i, :, :] += fold(p_i * p_i)   # pad contribution fixed in glue

        ce_pix = lse - picked                   # logsumexp(x) - x[target]
        if has_pad:
            ce_pix = jnp.where(tgt >= 0, ce_pix, 0.0)
        ce_ref[0, 0, :, :] += fold(ce_pix)

    return kernel


def _adjust_loss_weights_3(epoch, k=0.1, x0=150):
    sig = 1.0 / (1.0 + math.exp(-k * (epoch - x0)))
    return [1.0 - sig, 1.0 + sig]


def ce_dice_loss_functional(pred, target, epoch=None, initial_loss_weight=(1.0, 1.0),
                            block_bytes=2 << 20):
    """JAX/Pallas equivalent of CeDiceLoss_functionnal.forward.

    pred:   (N, C, H, W) float logits (native NCHW; f32 or bf16)
    target: (N, H, W) class indices (any real dtype; cast like .long())
    Returns (loss, loss_ce, loss_dice) as float32 scalars.
    """
    N, C, H, W = pred.shape
    HW = H * W
    n_pix = N * HW
    dtype_bytes = jnp.dtype(pred.dtype).itemsize

    # ---- plan pixel tiling: lanes = 128 pixels, sublanes = rows of 128 pixels ----
    S0 = -(-HW // 128)                             # ceil(HW / 128)
    row_bytes = C * 128 * dtype_bytes              # bytes of logits per pixel-row
    s_budget = max(8, ((block_bytes // row_bytes) // 8) * 8)
    if S0 <= 2 * s_budget:
        s_tile = S0                                # whole image per block
    else:
        s_tile = 0
        d = s_budget
        while d >= 8:
            if S0 % d == 0:
                s_tile = d
                break
            d -= 8
        if s_tile == 0:
            # TODO(synk): no multiple-of-8 divisor of the pixel-row count; falls back to
            # padding the pixel axis (one extra copy of the logits). Rare in practice.
            s_tile = s_budget
    S_pad = -(-S0 // s_tile) * s_tile
    hw_pad = S_pad * 128

    # batch folding: pack several images into one block when a single image is small
    if s_tile == S_pad:
        per_img = S_pad * row_bytes
        b_sub = max(1, min(N, block_bytes // max(per_img, 1)))
        while N % b_sub:
            b_sub -= 1
    else:
        b_sub = 1

    SA = 8 if s_tile % 8 == 0 else s_tile          # folded accumulator sublane extent
    fold_groups = s_tile // SA

    # ---- reshape inputs (copy-free when no padding is required) ----
    pred3 = pred.reshape(N, C, HW)
    tgt2 = target.astype(jnp.int32).reshape(N, HW)
    needs_pad = hw_pad != HW
    if needs_pad:
        pred3 = jnp.pad(pred3, ((0, 0), (0, 0), (0, hw_pad - HW)))
        tgt2 = jnp.pad(tgt2, ((0, 0), (0, hw_pad - HW)), constant_values=-1)
    pred4 = pred3.reshape(N, C, S_pad, 128)
    tgt3 = tgt2.reshape(N, S_pad, 128)

    NB = N // b_sub
    T = S_pad // s_tile

    # ---- 2-way split on the leading grid axis (per-split partials summed in glue) ----
    if T % 2 == 0:
        n_split, split = 2, "tiles"
    elif NB % 2 == 0:
        n_split, split = 2, "batch"
    else:
        n_split, split = 1, "none"

    if split == "tiles":
        t_per = T // n_split

        def pred_map(s, nb, t): return (nb, 0, s * t_per + t, 0)
        def tgt_map(s, nb, t): return (nb, s * t_per + t, 0)
        grid = (n_split, NB, t_per)
    elif split == "batch":
        nb_per = NB // n_split

        def pred_map(s, nb, t): return (s * nb_per + nb, 0, t, 0)
        def tgt_map(s, nb, t): return (s * nb_per + nb, t, 0)
        grid = (n_split, nb_per, T)
    else:
        def pred_map(s, nb, t): return (nb, 0, t, 0)
        def tgt_map(s, nb, t): return (nb, t, 0)
        grid = (1, NB, T)

    def acc_map(s, nb, t): return (s, 0, 0, 0)

    # ---- chip-aware compiler params ----
    n_cores, vmem_cap = _tpu_topology()
    split_sem = _CORE_PARALLEL if (n_split > 1 and n_cores == n_split) else _PARALLEL
    dims_sem = (split_sem, _ARBITRARY, _ARBITRARY)

    pred_blk_bytes = b_sub * C * s_tile * 128 * dtype_bytes
    tgt_blk_bytes = b_sub * s_tile * 128 * 4
    acc_bytes = (2 * C + 1) * SA * 128 * 4
    needed = 2 * (pred_blk_bytes + tgt_blk_bytes) + 2 * acc_bytes + (4 << 20)
    phys = vmem_cap if vmem_cap else (64 << 20)    # assume the smallest (v7x per-TC)
    vmem_limit = int(min(max(needed, 16 << 20), phys * 3 // 4))

    out_shape = (
        jax.ShapeDtypeStruct((n_split, C, SA, 128), jnp.float32),   # intersect partials
        jax.ShapeDtypeStruct((n_split, C, SA, 128), jnp.float32),   # sum(p^2) partials
        jax.ShapeDtypeStruct((n_split, 1, SA, 128), jnp.float32),   # CE partials
    )

    inter, zsum, ce = pl.pallas_call(
        _make_kernel(C, SA, fold_groups, needs_pad),
        out_shape=out_shape,
        grid_spec=pltpu.PrefetchScalarGridSpec(
            num_scalar_prefetch=0,
            grid=grid,
            in_specs=[
                pl.BlockSpec((b_sub, C, s_tile, 128), pred_map),
                pl.BlockSpec((b_sub, s_tile, 128), tgt_map),
            ],
            out_specs=[
                pl.BlockSpec((1, C, SA, 128), acc_map),
                pl.BlockSpec((1, C, SA, 128), acc_map),
                pl.BlockSpec((1, 1, SA, 128), acc_map),
            ],
        ),
        compiler_params=pltpu.CompilerParams(
            dimension_semantics=dims_sem,
            vmem_limit_bytes=vmem_limit,
        ),
    )(pred4, tgt3)

    # ---- tiny final reductions + scalar loss math in plain XLA ----
    inter_c = jnp.sum(inter, axis=(0, 2, 3))          # (C,)
    zsum_c = jnp.sum(zsum, axis=(0, 2, 3))            # (C,)
    ce_sum = jnp.sum(ce)

    # per-class pixel counts (sum of onehot^2) directly from the small integer target
    tgt_idx = target.astype(jnp.int32)
    ysum_c = jnp.stack([jnp.sum((tgt_idx == i).astype(jnp.float32)) for i in range(C)])

    if needs_pad:
        # padded logits are exactly 0 -> uniform softmax -> each class gets 1/C^2 per pad
        n_pad_px = jnp.float32(N * (hw_pad - HW))
        zsum_c = zsum_c - n_pad_px / jnp.float32(C * C)

    # nn.CrossEntropyLoss(reduction='mean') over all N*H*W pixels
    loss_ce = ce_sum / jnp.float32(n_pix)

    # nDiceLoss with softmax=True, uniform class weights
    smooth = 1e-5
    dice_loss_c = 1.0 - (2.0 * inter_c + smooth) / (zsum_c + ysum_c + smooth)
    loss_dice = jnp.sum(dice_loss_c) / jnp.float32(C)

    w = _adjust_loss_weights_3(epoch) if epoch is not None else list(initial_loss_weight)
    # TODO(synk): PyTorch CrossEntropyLoss input validation / ignore_index is not
    # modeled (the original module never sets it); out-of-range targets are ignored.
    loss = w[0] * loss_ce + w[1] * loss_dice
    return loss, loss_ce, loss_dice


def _reference(pred, target, epoch=None, initial_loss_weight=(1.0, 1.0)):
    """Pure-JAX reference for correctness checking."""
    N, C, H, W = pred.shape
    tgt = target.astype(jnp.int32)
    logits = pred.astype(jnp.float32)
    logp = jax.nn.log_softmax(logits, axis=1)
    onehot = jax.nn.one_hot(tgt, C, axis=1, dtype=jnp.float32)
    loss_ce = -jnp.mean(jnp.sum(logp * onehot, axis=1))
    probs = jax.nn.softmax(logits, axis=1)
    smooth = 1e-5
    inter = jnp.sum(probs * onehot, axis=(0, 2, 3))
    z = jnp.sum(probs * probs, axis=(0, 2, 3))
    y = jnp.sum(onehot * onehot, axis=(0, 2, 3))
    dice = 1.0 - (2.0 * inter + smooth) / (z + y + smooth)
    loss_dice = jnp.sum(dice) / C
    w = _adjust_loss_weights_3(epoch) if epoch is not None else list(initial_loss_weight)
    return w[0] * loss_ce + w[1] * loss_dice, loss_ce, loss_dice


if __name__ == "__main__":
    num_classes = 4
    N, H, W = 2, 16, 16

    key = jax.random.PRNGKey(0)
    k_pred, k_tgt = jax.random.split(key)
    pred = jax.random.normal(k_pred, (N, num_classes, H, W), dtype=jnp.float32)
    # target arrives as a float map of class indices (the forward does target.long())
    target = jax.random.randint(k_tgt, (N, H, W), 0, num_classes).astype(jnp.float32)

    epoch = 120  # exercise the dynamic weight schedule (_adjust_loss_weights_3)

    loss, loss_ce, loss_dice = ce_dice_loss_functional(pred, target, epoch=epoch)
    jax.block_until_ready((loss, loss_ce, loss_dice))

    ref_loss, ref_ce, ref_dice = _reference(pred, target, epoch=epoch)
    np.testing.assert_allclose(np.asarray(loss), np.asarray(ref_loss), rtol=1e-4, atol=1e-5)
    np.testing.assert_allclose(np.asarray(loss_ce), np.asarray(ref_ce), rtol=1e-4, atol=1e-5)
    np.testing.assert_allclose(np.asarray(loss_dice), np.asarray(ref_dice), rtol=1e-4, atol=1e-5)

    print("KERNEL_OK")
</pallas_src>

<mosaic_0001>
module attributes {stable_mosaic.version = 11 : i64} {
  func.func @kernel(%arg0: i32, %arg1: i32, %arg2: i32, %arg3: memref<2x4x2x128xf32, #tpu.memory_space<vmem>>, %arg4: memref<2x2x128xi32, #tpu.memory_space<vmem>>, %arg5: memref<1x4x2x128xf32, #tpu.memory_space<vmem>>, %arg6: memref<1x4x2x128xf32, #tpu.memory_space<vmem>>, %arg7: memref<1x1x2x128xf32, #tpu.memory_space<vmem>>) attributes {dimension_semantics = [#tpu.dimension_semantics<parallel>, #tpu.dimension_semantics<arbitrary>, #tpu.dimension_semantics<arbitrary>], iteration_bounds = array<i64: 1, 1, 1>, scalar_prefetch = 0 : i64, scratch_operands = 0 : i64, tpu.core_type = #tpu.core_type<tc>, window_params = [{transform_indices = @transform_0, window_bounds = array<i64: 2, 4, 2, 128>}, {transform_indices = @transform_1, window_bounds = array<i64: 2, 2, 128>}, {transform_indices = @transform_2, window_bounds = array<i64: 1, 4, 2, 128>}, {transform_indices = @transform_3, window_bounds = array<i64: 1, 4, 2, 128>}, {transform_indices = @transform_4, window_bounds = array<i64: 1, 1, 2, 128>}]} {
    %c0_i32 = arith.constant 0 : i32
    %0 = arith.cmpi eq, %arg1, %c0_i32 : i32
    %c0_i32_0 = arith.constant 0 : i32
    %1 = arith.cmpi eq, %arg2, %c0_i32_0 : i32
    %2 = arith.andi %0, %1 : i1
    %3 = arith.extui %2 : i1 to i32
    %c0_i32_1 = arith.constant 0 : i32
    %4 = arith.cmpi ne, %3, %c0_i32_1 : i32
    scf.if %4 {
      %cst_92 = arith.constant 0.000000e+00 : f32
      %151 = vector.broadcast %cst_92 : f32 to vector<1x4x2x128xf32>
      %c0_93 = arith.constant 0 : index
      %c0_94 = arith.constant 0 : index
      %c0_95 = arith.constant 0 : index
      %c0_96 = arith.constant 0 : index
      %152 = vector.load %arg5[%c0_93, %c0_94, %c0_95, %c0_96] : memref<1x4x2x128xf32, #tpu.memory_space<vmem>>, vector<1x4x2x128xf32>
      tpu.vector_store %arg5[%c0_93, %c0_94, %c0_95, %c0_96], %151 {strides = array<i32>} : memref<1x4x2x128xf32, #tpu.memory_space<vmem>>, vector<1x4x2x128xf32>,
      %cst_97 = arith.constant 0.000000e+00 : f32
      %153 = vector.broadcast %cst_97 : f32 to vector<1x4x2x128xf32>
      %c0_98 = arith.constant 0 : index
      %c0_99 = arith.constant 0 : index
      %c0_100 = arith.constant 0 : index
      %c0_101 = arith.constant 0 : index
      %154 = vector.load %arg6[%c0_98, %c0_99, %c0_100, %c0_101] : memref<1x4x2x128xf32, #tpu.memory_space<vmem>>, vector<1x4x2x128xf32>
      tpu.vector_store %arg6[%c0_98, %c0_99, %c0_100, %c0_101], %153 {strides = array<i32>} : memref<1x4x2x128xf32, #tpu.memory_space<vmem>>, vector<1x4x2x128xf32>,
      %cst_102 = arith.constant 0.000000e+00 : f32
      %155 = vector.broadcast %cst_102 : f32 to vector<1x1x2x128xf32>
      %c0_103 = arith.constant 0 : index
      %c0_104 = arith.constant 0 : index
      %c0_105 = arith.constant 0 : index
      %c0_106 = arith.constant 0 : index
      %156 = vector.load %arg7[%c0_103, %c0_104, %c0_105, %c0_106] : memref<1x1x2x128xf32, #tpu.memory_space<vmem>>, vector<1x1x2x128xf32>
      tpu.vector_store %arg7[%c0_103, %c0_104, %c0_105, %c0_106], %155 {strides = array<i32>} : memref<1x1x2x128xf32, #tpu.memory_space<vmem>>, vector<1x1x2x128xf32>,
    } else {
    }
    %c0 = arith.constant 0 : index
    %c0_2 = arith.constant 0 : index
    %c0_3 = arith.constant 0 : index
    %c0_4 = arith.constant 0 : index
    %5 = vector.load %arg3[%c0, %c0_2, %c0_3, %c0_4] : memref<2x4x2x128xf32, #tpu.memory_space<vmem>>, vector<2x4x2x128xf32>
    %c0_5 = arith.constant 0 : index
    %c0_6 = arith.constant 0 : index
    %c0_7 = arith.constant 0 : index
    %6 = vector.load %arg4[%c0_5, %c0_6, %c0_7] : memref<2x2x128xi32, #tpu.memory_space<vmem>>, vector<2x2x128xi32>
    %7 = vector.extract_strided_slice %5 {offsets = [0, 0, 0, 0], sizes = [2, 1, 2, 128], strides = [1, 1, 1, 1]} : vector<2x4x2x128xf32> to vector<2x1x2x128xf32>
    %8 = vector.shape_cast %7 : vector<2x1x2x128xf32> to vector<2x2x128xf32>
    %9 = vector.extract_strided_slice %5 {offsets = [0, 1, 0, 0], sizes = [2, 1, 2, 128], strides = [1, 1, 1, 1]} : vector<2x4x2x128xf32> to vector<2x1x2x128xf32>
    %10 = vector.shape_cast %9 : vector<2x1x2x128xf32> to vector<2x2x128xf32>
    %11 = arith.maximumf %8, %10 : vector<2x2x128xf32>
    %12 = vector.extract_strided_slice %5 {offsets = [0, 2, 0, 0], sizes = [2, 1, 2, 128], strides = [1, 1, 1, 1]} : vector<2x4x2x128xf32> to vector<2x1x2x128xf32>
    %13 = vector.shape_cast %12 : vector<2x1x2x128xf32> to vector<2x2x128xf32>
    %14 = arith.maximumf %11, %13 : vector<2x2x128xf32>
    %15 = vector.extract_strided_slice %5 {offsets = [0, 3, 0, 0], sizes = [2, 1, 2, 128], strides = [1, 1, 1, 1]} : vector<2x4x2x128xf32> to vector<2x1x2x128xf32>
    %16 = vector.shape_cast %15 : vector<2x1x2x128xf32> to vector<2x2x128xf32>
    %17 = arith.maximumf %14, %16 : vector<2x2x128xf32>
    %18 = vector.extract_strided_slice %5 {offsets = [0, 0, 0, 0], sizes = [2, 1, 2, 128], strides = [1, 1, 1, 1]} : vector<2x4x2x128xf32> to vector<2x1x2x128xf32>
    %19 = vector.shape_cast %18 : vector<2x1x2x128xf32> to vector<2x2x128xf32>
    %20 = arith.subf %19, %17 : vector<2x2x128xf32>
    %21 = math.exp %20 : vector<2x2x128xf32>
    %22 = vector.extract_strided_slice %5 {offsets = [0, 1, 0, 0], sizes = [2, 1, 2, 128], strides = [1, 1, 1, 1]} : vector<2x4x2x128xf32> to vector<2x1x2x128xf32>
    %23 = vector.shape_cast %22 : vector<2x1x2x128xf32> to vector<2x2x128xf32>
    %24 = arith.subf %23, %17 : vector<2x2x128xf32>
    %25 = math.exp %24 : vector<2x2x128xf32>
    %26 = vector.extract_strided_slice %5 {offsets = [0, 2, 0, 0], sizes = [2, 1, 2, 128], strides = [1, 1, 1, 1]} : vector<2x4x2x128xf32> to vector<2x1x2x128xf32>
    %27 = vector.shape_cast %26 : vector<2x1x2x128xf32> to vector<2x2x128xf32>
    %28 = arith.subf %27, %17 : vector<2x2x128xf32>
    %29 = math.exp %28 : vector<2x2x128xf32>
    %30 = vector.extract_strided_slice %5 {offsets = [0, 3, 0, 0], sizes = [2, 1, 2, 128], strides = [1, 1, 1, 1]} : vector<2x4x2x128xf32> to vector<2x1x2x128xf32>
    %31 = vector.shape_cast %30 : vector<2x1x2x128xf32> to vector<2x2x128xf32>
    %32 = arith.subf %31, %17 : vector<2x2x128xf32>
    %33 = math.exp %32 : vector<2x2x128xf32>
    %34 = arith.addf %21, %25 : vector<2x2x128xf32>
    %35 = arith.addf %34, %29 : vector<2x2x128xf32>
    %36 = arith.addf %35, %33 : vector<2x2x128xf32>
    %cst = arith.constant 1.000000e+00 : f32
    %37 = vector.broadcast %cst : f32 to vector<2x2x128xf32>
    %38 = arith.divf %37, %36 : vector<2x2x128xf32>
    %39 = math.log %36 : vector<2x2x128xf32>
    %40 = arith.addf %17, %39 : vector<2x2x128xf32>
    %cst_8 = arith.constant 0.000000e+00 : f32
    %41 = vector.broadcast %cst_8 : f32 to vector<2x2x128xf32>
    %c0_i32_9 = arith.constant 0 : i32
    %42 = vector.broadcast %c0_i32_9 : i32 to vector<2x2x128xi32>
    %43 = arith.cmpi eq, %6, %42 : vector<2x2x128xi32>
    %44 = arith.mulf %21, %38 : vector<2x2x128xf32>
    %45 = vector.extract_strided_slice %5 {offsets = [0, 0, 0, 0], sizes = [2, 1, 2, 128], strides = [1, 1, 1, 1]} : vector<2x4x2x128xf32> to vector<2x1x2x128xf32>
    %46 = vector.shape_cast %45 : vector<2x1x2x128xf32> to vector<2x2x128xf32>
    %47 = arith.select %43, %46, %41 : vector<2x2x128xi1>, vector<2x2x128xf32>
    %c0_10 = arith.constant 0 : index
    %c0_11 = arith.constant 0 : index
    %c0_12 = arith.constant 0 : index
    %c0_13 = arith.constant 0 : index
    %48 = vector.load %arg5[%c0_10, %c0_11, %c0_12, %c0_13] : memref<1x4x2x128xf32, #tpu.memory_space<vmem>>, vector<1x1x2x128xf32>
    %49 = vector.shape_cast %48 : vector<1x1x2x128xf32> to vector<2x128xf32>
    %cst_14 = arith.constant 0.000000e+00 : f32
    %50 = vector.broadcast %cst_14 : f32 to vector<2x2x128xf32>
    %51 = arith.select %43, %44, %50 : vector<2x2x128xi1>, vector<2x2x128xf32>
    %52 = vector.shape_cast %51 : vector<2x2x128xf32> to vector<2x1x2x128xf32>
    %cst_15 = arith.constant dense<0.000000e+00> : vector<2x128xf32>
    %53 = vector.multi_reduction <add>, %52, %cst_15 [0, 1] : vector<2x1x2x128xf32> to vector<2x128xf32>
    %54 = arith.addf %49, %53 : vector<2x128xf32>
    %c0_16 = arith.constant 0 : index
    %c0_17 = arith.constant 0 : index
    %c0_18 = arith.constant 0 : index
    %c0_19 = arith.constant 0 : index
    %55 = vector.load %arg5[%c0_16, %c0_17, %c0_18, %c0_19] : memref<1x4x2x128xf32, #tpu.memory_space<vmem>>, vector<1x1x2x128xf32>
    %56 = vector.shape_cast %55 : vector<1x1x2x128xf32> to vector<2x128xf32>
    %57 = vector.shape_cast %54 : vector<2x128xf32> to vector<1x1x2x128xf32>
    tpu.vector_store %arg5[%c0_16, %c0_17, %c0_18, %c0_19], %57 {strides = array<i32>} : memref<1x4x2x128xf32, #tpu.memory_space<vmem>>, vector<1x1x2x128xf32>,
    %c0_20 = arith.constant 0 : index
    %c0_21 = arith.constant 0 : index
    %c0_22 = arith.constant 0 : index
    %c0_23 = arith.constant 0 : index
    %58 = vector.load %arg6[%c0_20, %c0_21, %c0_22, %c0_23] : memref<1x4x2x128xf32, #tpu.memory_space<vmem>>, vector<1x1x2x128xf32>
    %59 = vector.shape_cast %58 : vector<1x1x2x128xf32> to vector<2x128xf32>
    %60 = arith.mulf %44, %44 : vector<2x2x128xf32>
    %61 = vector.shape_cast %60 : vector<2x2x128xf32> to vector<2x1x2x128xf32>
    %cst_24 = arith.constant dense<0.000000e+00> : vector<2x128xf32>
    %62 = vector.multi_reduction <add>, %61, %cst_24 [0, 1] : vector<2x1x2x128xf32> to vector<2x128xf32>
    %63 = arith.addf %59, %62 : vector<2x128xf32>
    %c0_25 = arith.constant 0 : index
    %c0_26 = arith.constant 0 : index
    %c0_27 = arith.constant 0 : index
    %c0_28 = arith.constant 0 : index
    %64 = vector.load %arg6[%c0_25, %c0_26, %c0_27, %c0_28] : memref<1x4x2x128xf32, #tpu.memory_space<vmem>>, vector<1x1x2x128xf32>
    %65 = vector.shape_cast %64 : vector<1x1x2x128xf32> to vector<2x128xf32>
    %66 = vector.shape_cast %63 : vector<2x128xf32> to vector<1x1x2x128xf32>
    tpu.vector_store %arg6[%c0_25, %c0_26, %c0_27, %c0_28], %66 {strides = array<i32>} : memref<1x4x2x128xf32, #tpu.memory_space<vmem>>, vector<1x1x2x128xf32>,
    %c1_i32 = arith.constant 1 : i32
    %67 = vector.broadcast %c1_i32 : i32 to vector<2x2x128xi32>
    %68 = arith.cmpi eq, %6, %67 : vector<2x2x128xi32>
    %69 = arith.mulf %25, %38 : vector<2x2x128xf32>
    %70 = vector.extract_strided_slice %5 {offsets = [0, 1, 0, 0], sizes = [2, 1, 2, 128], strides = [1, 1, 1, 1]} : vector<2x4x2x128xf32> to vector<2x1x2x128xf32>
    %71 = vector.shape_cast %70 : vector<2x1x2x128xf32> to vector<2x2x128xf32>
    %72 = arith.select %68, %71, %47 : vector<2x2x128xi1>, vector<2x2x128xf32>
    %c0_29 = arith.constant 0 : index
    %c1 = arith.constant 1 : index
    %c0_30 = arith.constant 0 : index
    %c0_31 = arith.constant 0 : index
    %73 = vector.load %arg5[%c0_29, %c1, %c0_30, %c0_31] : memref<1x4x2x128xf32, #tpu.memory_space<vmem>>, vector<1x1x2x128xf32>
    %74 = vector.shape_cast %73 : vector<1x1x2x128xf32> to vector<2x128xf32>
    %cst_32 = arith.constant 0.000000e+00 : f32
    %75 = vector.broadcast %cst_32 : f32 to vector<2x2x128xf32>
    %76 = arith.select %68, %69, %75 : vector<2x2x128xi1>, vector<2x2x128xf32>
    %77 = vector.shape_cast %76 : vector<2x2x128xf32> to vector<2x1x2x128xf32>
    %cst_33 = arith.constant dense<0.000000e+00> : vector<2x128xf32>
    %78 = vector.multi_reduction <add>, %77, %cst_33 [0, 1] : vector<2x1x2x128xf32> to vector<2x128xf32>
    %79 = arith.addf %74, %78 : vector<2x128xf32>
    %c0_34 = arith.constant 0 : index
    %c1_35 = arith.constant 1 : index
    %c0_36 = arith.constant 0 : index
    %c0_37 = arith.constant 0 : index
    %80 = vector.load %arg5[%c0_34, %c1_35, %c0_36, %c0_37] : memref<1x4x2x128xf32, #tpu.memory_space<vmem>>, vector<1x1x2x128xf32>
    %81 = vector.shape_cast %80 : vector<1x1x2x128xf32> to vector<2x128xf32>
    %82 = vector.shape_cast %79 : vector<2x128xf32> to vector<1x1x2x128xf32>
    tpu.vector_store %arg5[%c0_34, %c1_35, %c0_36, %c0_37], %82 {strides = array<i32>} : memref<1x4x2x128xf32, #tpu.memory_space<vmem>>, vector<1x1x2x128xf32>,
    %c0_38 = arith.constant 0 : index
    %c1_39 = arith.constant 1 : index
    %c0_40 = arith.constant 0 : index
    %c0_41 = arith.constant 0 : index
    %83 = vector.load %arg6[%c0_38, %c1_39, %c0_40, %c0_41] : memref<1x4x2x128xf32, #tpu.memory_space<vmem>>, vector<1x1x2x128xf32>
    %84 = vector.shape_cast %83 : vector<1x1x2x128xf32> to vector<2x128xf32>
    %85 = arith.mulf %69, %69 : vector<2x2x128xf32>
    %86 = vector.shape_cast %85 : vector<2x2x128xf32> to vector<2x1x2x128xf32>
    %cst_42 = arith.constant dense<0.000000e+00> : vector<2x128xf32>
    %87 = vector.multi_reduction <add>, %86, %cst_42 [0, 1] : vector<2x1x2x128xf32> to vector<2x128xf32>
    %88 = arith.addf %84, %87 : vector<2x128xf32>
    %c0_43 = arith.constant 0 : index
    %c1_44 = arith.constant 1 : index
    %c0_45 = arith.constant 0 : index
    %c0_46 = arith.constant 0 : index
    %89 = vector.load %arg6[%c0_43, %c1_44, %c0_45, %c0_46] : memref<1x4x2x128xf32, #tpu.memory_space<vmem>>, vector<1x1x2x128xf32>
    %90 = vector.shape_cast %89 : vector<1x1x2x128xf32> to vector<2x128xf32>
    %91 = vector.shape_cast %88 : vector<2x128xf32> to vector<1x1x2x128xf32>
    tpu.vector_store %arg6[%c0_43, %c1_44, %c0_45, %c0_46], %91 {strides = array<i32>} : memref<1x4x2x128xf32, #tpu.memory_space<vmem>>, vector<1x1x2x128xf32>,
    %c2_i32 = arith.constant 2 : i32
    %92 = vector.broadcast %c2_i32 : i32 to vector<2x2x128xi32>
    %93 = arith.cmpi eq, %6, %92 : vector<2x2x128xi32>
    %94 = arith.mulf %29, %38 : vector<2x2x128xf32>
    %95 = vector.extract_strided_slice %5 {offsets = [0, 2, 0, 0], sizes = [2, 1, 2, 128], strides = [1, 1, 1, 1]} : vector<2x4x2x128xf32> to vector<2x1x2x128xf32>
    %96 = vector.shape_cast %95 : vector<2x1x2x128xf32> to vector<2x2x128xf32>
    %97 = arith.select %93, %96, %72 : vector<2x2x128xi1>, vector<2x2x128xf32>
    %c0_47 = arith.constant 0 : index
    %c2 = arith.constant 2 : index
    %c0_48 = arith.constant 0 : index
    %c0_49 = arith.constant 0 : index
    %98 = vector.load %arg5[%c0_47, %c2, %c0_48, %c0_49] : memref<1x4x2x128xf32, #tpu.memory_space<vmem>>, vector<1x1x2x128xf32>
    %99 = vector.shape_cast %98 : vector<1x1x2x128xf32> to vector<2x128xf32>
    %cst_50 = arith.constant 0.000000e+00 : f32
    %100 = vector.broadcast %cst_50 : f32 to vector<2x2x128xf32>
    %101 = arith.select %93, %94, %100 : vector<2x2x128xi1>, vector<2x2x128xf32>
    %102 = vector.shape_cast %101 : vector<2x2x128xf32> to vector<2x1x2x128xf32>
    %cst_51 = arith.constant dense<0.000000e+00> : vector<2x128xf32>
    %103 = vector.multi_reduction <add>, %102, %cst_51 [0, 1] : vector<2x1x2x128xf32> to vector<2x128xf32>
    %104 = arith.addf %99, %103 : vector<2x128xf32>
    %c0_52 = arith.constant 0 : index
    %c2_53 = arith.constant 2 : index
    %c0_54 = arith.constant 0 : index
    %c0_55 = arith.constant 0 : index
    %105 = vector.load %arg5[%c0_52, %c2_53, %c0_54, %c0_55] : memref<1x4x2x128xf32, #tpu.memory_space<vmem>>, vector<1x1x2x128xf32>
    %106 = vector.shape_cast %105 : vector<1x1x2x128xf32> to vector<2x128xf32>
    %107 = vector.shape_cast %104 : vector<2x128xf32> to vector<1x1x2x128xf32>
    tpu.vector_store %arg5[%c0_52, %c2_53, %c0_54, %c0_55], %107 {strides = array<i32>} : memref<1x4x2x128xf32, #tpu.memory_space<vmem>>, vector<1x1x2x128xf32>,
    %c0_56 = arith.constant 0 : index
    %c2_57 = arith.constant 2 : index
    %c0_58 = arith.constant 0 : index
    %c0_59 = arith.constant 0 : index
    %108 = vector.load %arg6[%c0_56, %c2_57, %c0_58, %c0_59] : memref<1x4x2x128xf32, #tpu.memory_space<vmem>>, vector<1x1x2x128xf32>
    %109 = vector.shape_cast %108 : vector<1x1x2x128xf32> to vector<2x128xf32>
    %110 = arith.mulf %94, %94 : vector<2x2x128xf32>
    %111 = vector.shape_cast %110 : vector<2x2x128xf32> to vector<2x1x2x128xf32>
    %cst_60 = arith.constant dense<0.000000e+00> : vector<2x128xf32>
    %112 = vector.multi_reduction <add>, %111, %cst_60 [0, 1] : vector<2x1x2x128xf32> to vector<2x128xf32>
    %113 = arith.addf %109, %112 : vector<2x128xf32>
    %c0_61 = arith.constant 0 : index
    %c2_62 = arith.constant 2 : index
    %c0_63 = arith.constant 0 : index
    %c0_64 = arith.constant 0 : index
    %114 = vector.load %arg6[%c0_61, %c2_62, %c0_63, %c0_64] : memref<1x4x2x128xf32, #tpu.memory_space<vmem>>, vector<1x1x2x128xf32>
    %115 = vector.shape_cast %114 : vector<1x1x2x128xf32> to vector<2x128xf32>
    %116 = vector.shape_cast %113 : vector<2x128xf32> to vector<1x1x2x128xf32>
    tpu.vector_store %arg6[%c0_61, %c2_62, %c0_63, %c0_64], %116 {strides = array<i32>} : memref<1x4x2x128xf32, #tpu.memory_space<vmem>>, vector<1x1x2x128xf32>,
    %c3_i32 = arith.constant 3 : i32
    %117 = vector.broadcast %c3_i32 : i32 to vector<2x2x128xi32>
    %118 = arith.cmpi eq, %6, %117 : vector<2x2x128xi32>
    %119 = arith.mulf %33, %38 : vector<2x2x128xf32>
    %120 = vector.extract_strided_slice %5 {offsets = [0, 3, 0, 0], sizes = [2, 1, 2, 128], strides = [1, 1, 1, 1]} : vector<2x4x2x128xf32> to vector<2x1x2x128xf32>
    %121 = vector.shape_cast %120 : vector<2x1x2x128xf32> to vector<2x2x128xf32>
    %122 = arith.select %118, %121, %97 : vector<2x2x128xi1>, vector<2x2x128xf32>
    %c0_65 = arith.constant 0 : index
    %c3 = arith.constant 3 : index
    %c0_66 = arith.constant 0 : index
    %c0_67 = arith.constant 0 : index
    %123 = vector.load %arg5[%c0_65, %c3, %c0_66, %c0_67] : memref<1x4x2x128xf32, #tpu.memory_space<vmem>>, vector<1x1x2x128xf32>
    %124 = vector.shape_cast %123 : vector<1x1x2x128xf32> to vector<2x128xf32>
    %cst_68 = arith.constant 0.000000e+00 : f32
    %125 = vector.broadcast %cst_68 : f32 to vector<2x2x128xf32>
    %126 = arith.select %118, %119, %125 : vector<2x2x128xi1>, vector<2x2x128xf32>
    %127 = vector.shape_cast %126 : vector<2x2x128xf32> to vector<2x1x2x128xf32>
    %cst_69 = arith.constant dense<0.000000e+00> : vector<2x128xf32>
    %128 = vector.multi_reduction <add>, %127, %cst_69 [0, 1] : vector<2x1x2x128xf32> to vector<2x128xf32>
    %129 = arith.addf %124, %128 : vector<2x128xf32>
    %c0_70 = arith.constant 0 : index
    %c3_71 = arith.constant 3 : index
    %c0_72 = arith.constant 0 : index
    %c0_73 = arith.constant 0 : index
    %130 = vector.load %arg5[%c0_70, %c3_71, %c0_72, %c0_73] : memref<1x4x2x128xf32, #tpu.memory_space<vmem>>, vector<1x1x2x128xf32>
    %131 = vector.shape_cast %130 : vector<1x1x2x128xf32> to vector<2x128xf32>
    %132 = vector.shape_cast %129 : vector<2x128xf32> to vector<1x1x2x128xf32>
    tpu.vector_store %arg5[%c0_70, %c3_71, %c0_72, %c0_73], %132 {strides = array<i32>} : memref<1x4x2x128xf32, #tpu.memory_space<vmem>>, vector<1x1x2x128xf32>,
    %c0_74 = arith.constant 0 : index
    %c3_75 = arith.constant 3 : index
    %c0_76 = arith.constant 0 : index
    %c0_77 = arith.constant 0 : index
    %133 = vector.load %arg6[%c0_74, %c3_75, %c0_76, %c0_77] : memref<1x4x2x128xf32, #tpu.memory_space<vmem>>, vector<1x1x2x128xf32>
    %134 = vector.shape_cast %133 : vector<1x1x2x128xf32> to vector<2x128xf32>
    %135 = arith.mulf %119, %119 : vector<2x2x128xf32>
    %136 = vector.shape_cast %135 : vector<2x2x128xf32> to vector<2x1x2x128xf32>
    %cst_78 = arith.constant dense<0.000000e+00> : vector<2x128xf32>
    %137 = vector.multi_reduction <add>, %136, %cst_78 [0, 1] : vector<2x1x2x128xf32> to vector<2x128xf32>
    %138 = arith.addf %134, %137 : vector<2x128xf32>
    %c0_79 = arith.constant 0 : index
    %c3_80 = arith.constant 3 : index
    %c0_81 = arith.constant 0 : index
    %c0_82 = arith.constant 0 : index
    %139 = vector.load %arg6[%c0_79, %c3_80, %c0_81, %c0_82] : memref<1x4x2x128xf32, #tpu.memory_space<vmem>>, vector<1x1x2x128xf32>
    %140 = vector.shape_cast %139 : vector<1x1x2x128xf32> to vector<2x128xf32>
    %141 = vector.shape_cast %138 : vector<2x128xf32> to vector<1x1x2x128xf32>
    tpu.vector_store %arg6[%c0_79, %c3_80, %c0_81, %c0_82], %141 {strides = array<i32>} : memref<1x4x2x128xf32, #tpu.memory_space<vmem>>, vector<1x1x2x128xf32>,
    %142 = arith.subf %40, %122 : vector<2x2x128xf32>
    %c0_83 = arith.constant 0 : index
    %c0_84 = arith.constant 0 : index
    %c0_85 = arith.constant 0 : index
    %c0_86 = arith.constant 0 : index
    %143 = vector.load %arg7[%c0_83, %c0_84, %c0_85, %c0_86] : memref<1x1x2x128xf32, #tpu.memory_space<vmem>>, vector<1x1x2x128xf32>
    %144 = vector.shape_cast %143 : vector<1x1x2x128xf32> to vector<2x128xf32>
    %145 = vector.shape_cast %142 : vector<2x2x128xf32> to vector<2x1x2x128xf32>
    %cst_87 = arith.constant dense<0.000000e+00> : vector<2x128xf32>
    %146 = vector.multi_reduction <add>, %145, %cst_87 [0, 1] : vector<2x1x2x128xf32> to vector<2x128xf32>
    %147 = arith.addf %144, %146 : vector<2x128xf32>
    %c0_88 = arith.constant 0 : index
    %c0_89 = arith.constant 0 : index
    %c0_90 = arith.constant 0 : index
    %c0_91 = arith.constant 0 : index
    %148 = vector.load %arg7[%c0_88, %c0_89, %c0_90, %c0_91] : memref<1x1x2x128xf32, #tpu.memory_space<vmem>>, vector<1x1x2x128xf32>
    %149 = vector.shape_cast %148 : vector<1x1x2x128xf32> to vector<2x128xf32>
    %150 = vector.shape_cast %147 : vector<2x128xf32> to vector<1x1x2x128xf32>
    tpu.vector_store %arg7[%c0_88, %c0_89, %c0_90, %c0_91], %150 {strides = array<i32>} : memref<1x1x2x128xf32, #tpu.memory_space<vmem>>, vector<1x1x2x128xf32>,
    return
  }
  func.func @transform_0(%arg0: i32, %arg1: i32, %arg2: i32) -> (i32, i32, i32, i32) {
    %c0_i32 = arith.constant 0 : i32
    %c0_i32_0 = arith.constant 0 : i32
    %c0_i32_1 = arith.constant 0 : i32
    return %arg1, %c0_i32, %arg2, %c0_i32_0 : i32, i32, i32, i32
  }
  func.func @transform_1(%arg0: i32, %arg1: i32, %arg2: i32) -> (i32, i32, i32) {
    %c0_i32 = arith.constant 0 : i32
    %c0_i32_0 = arith.constant 0 : i32
    return %arg1, %arg2, %c0_i32 : i32, i32, i32
  }
  func.func @transform_2(%arg0: i32, %arg1: i32, %arg2: i32) -> (i32, i32, i32, i32) {
    %c0_i32 = arith.constant 0 : i32
    %c0_i32_0 = arith.constant 0 : i32
    %c0_i32_1 = arith.constant 0 : i32
    %c0_i32_2 = arith.constant 0 : i32
    return %arg0, %c0_i32, %c0_i32_0, %c0_i32_1 : i32, i32, i32, i32
  }
  func.func @transform_3(%arg0: i32, %arg1: i32, %arg2: i32) -> (i32, i32, i32, i32) {
    %c0_i32 = arith.constant 0 : i32
    %c0_i32_0 = arith.constant 0 : i32
    %c0_i32_1 = arith.constant 0 : i32
    %c0_i32_2 = arith.constant 0 : i32
    return %arg0, %c0_i32, %c0_i32_0, %c0_i32_1 : i32, i32, i32, i32
  }
  func.func @transform_4(%arg0: i32, %arg1: i32, %arg2: i32) -> (i32, i32, i32, i32) {
    %c0_i32 = arith.constant 0 : i32
    %c0_i32_0 = arith.constant 0 : i32
    %c0_i32_1 = arith.constant 0 : i32
    %c0_i32_2 = arith.constant 0 : i32
    return %arg0, %c0_i32, %c0_i32_0, %c0_i32_1 : i32, i32, i32, i32
  }
}

</mosaic_0001>

<bundles_post_ra>
// kernel: tpu_custom_call.1
= control target key start
LH: loop header
LB: loop body
LE: loop exit
PB: predicated region body
PF: predicated region fallthrough
CT: control target
= control target key end

     0   :  { %10 = vsyncpa [#allocation3], 0  ;;  %s629_s0 = inlined_call_operand.hbm [shape: f32[2,4,2,128], index: 0, kind: input, shape index: {}]   ;;  %s630_s1 = inlined_call_operand.hbm [shape: s32[2,2,128], index: 1, kind: input, shape index: {}]   ;;  %s631_s2 = inlined_call_operand.hbm [shape: f32[1,4,2,128], index: 2, kind: output, shape index: {0}]   ;;  %s632_s3 = inlined_call_operand.hbm [shape: f32[1,4,2,128], index: 3, kind: output, shape index: {1}]   ;;  %s633_s4 = inlined_call_operand.hbm [shape: f32[1,1,2,128], index: 4, kind: output, shape index: {2}]  }
   0x1   :  { %11 = vsyncpa [#allocation6], 0 }
   0x2   :  { %12 = vsyncpa [#allocation4], 0 }
   0x3   :  { %13 = vsyncpa [#allocation9], 0  ;;  %s415_s15 = smov [#allocation2]   ;;  %s297_s19 = scalar_lea.hbm %s629_s0, 256 }
   0x4   :  { %s19_s16 = sshll.u32 %s415_s15, 4  ;;  %p298_p0 = scmp.ne.s32.totalorder %s629_s0, %s297_s19  ;;  %s20_s16 = int_to_ptr.vmem [resolvable:$true] %s19_s16 }
   0x5   :  { %p301_p1 = scmp.lt.u32.totalorder %s297_s19, %s629_s0 }
   0x7   :  { %p303_p2 = pnand %p301_p1, %p298_p0 }
   0x9   :  { %306 = shalt.err (!%p303_p2)
}
   0xa   :  { %s307_s24 = scalar_lea.vmem %s20_s16, 256  ;;  %p312_p4 = scmp.lt.s32.totalorder %s20_s16, %s20_s16 }
   0xb   :  { %p308_p3 = scmp.ne.s32.totalorder %s20_s16, %s307_s24  ;;  %p313_p5 = scmp.lt.s32.totalorder %s307_s24, %s307_s24 }
   0xd   :  { %p314_p6 = por %p313_p5, %p312_p4 }
   0xf   :  { %p315_p7 = pnand %p314_p6, %p308_p3 }
  0x11   :  { %318 = shalt.err (!%p315_p7)
}
  0x12   :  { %s416_s25 = smov 32   ;;  %s417_s26 = smov 2  }
  0x13   :  { %25 = dma.hbm_to_vmem [thread:$0]  %s629_s0, 256, %s20_s16, [#allocation3], %s416_s25, %s416_s25, %s417_s26  }
  0x14   :  { %s418_s29 = smov [#allocation5]   ;;  %s319_s7 = scalar_lea.hbm %s630_s1, 64 }
  0x15   :  { %s31_s30 = sshll.u32 %s418_s29, 4  ;;  %p320_p8 = scmp.ne.s32.totalorder %s630_s1, %s319_s7  ;;  %s32_s30 = int_to_ptr.vmem [resolvable:$true] %s31_s30 }
  0x16   :  { %p323_p9 = scmp.lt.u32.totalorder %s319_s7, %s630_s1 }
  0x18   :  { %p325_p10 = pnand %p323_p9, %p320_p8 }
  0x1a   :  { %328 = shalt.err (!%p325_p10)
}
  0x1b   :  { %s329_s12 = scalar_lea.vmem %s32_s30, 64  ;;  %p334_p12 = scmp.lt.s32.totalorder %s32_s30, %s32_s30 }
  0x1c   :  { %p330_p11 = scmp.ne.s32.totalorder %s32_s30, %s329_s12  ;;  %p335_p13 = scmp.lt.s32.totalorder %s329_s12, %s329_s12 }
  0x1e   :  { %p336_p0 = por %p335_p13, %p334_p12 }
  0x20   :  { %p337_p1 = pnand %p336_p0, %p330_p11 }
  0x22   :  { %340 = shalt.err (!%p337_p1)
}
  0x23   :  { %37 = dma.hbm_to_vmem [thread:$0]  %s630_s1, 64, %s32_s30, [#allocation6], %s416_s25, %s416_s25, %s417_s26  }
  0x24   :  { %407 = dma.done.wait [#allocation3], 256  }
  0x25   :  { %408 = vsyncadd [#allocation3], 4294967040 }
  0x26   :  { %409 = dma.done.wait [#allocation6], 64  }
  0x27   :  { %410 = vsyncadd [#allocation6], 4294967232  ;;  %v419_v0 = vmov 0.0   ;;  %v59_v1 = vld [vmem:[#allocation2] sm:$0x3]  ;;  %vm124_vm6 = vcmask 1041408  }
  0x28   :  { %54 = vst [vmem:[#allocation8] sm:$0x3] %v419_v0  ;;  %50 = vst [vmem:[#allocation7] sm:$0x3] %v419_v0  ;;  %v60_v2 = vld [vmem:[#allocation2 + $0x2] sm:$0x3] }
  0x29   :  { %51 = vst [vmem:[#allocation7 + $0x2] sm:$0x3] %v419_v0  ;;  %52 = vst [vmem:[#allocation7 + $0x4] sm:$0x3] %v419_v0  ;;  %v478_v3 = vld [vmem:[#allocation2 + $0x4] sm:$0x3]  ;;  %v69_v6 = vmax.f32 %v59_v1, %v60_v2 }
  0x2a   :  { %53 = vst [vmem:[#allocation7 + $0x6] sm:$0x3] %v419_v0  ;;  %55 = vst [vmem:[#allocation8 + $0x2] sm:$0x3] %v419_v0  ;;  %v63_v4 = vld [vmem:[#allocation2 + $0x8] sm:$0x3] }
  0x2b   :  { %56 = vst [vmem:[#allocation8 + $0x4] sm:$0x3] %v419_v0  ;;  %57 = vst [vmem:[#allocation8 + $0x6] sm:$0x3] %v419_v0  ;;  %v64_v5 = vld [vmem:[#allocation2 + $0xa] sm:$0x3]  ;;  %v71_v11 = vmax.f32 %v69_v6, %v478_v3 }
  0x2c   :  { %58 = vst [vmem:[#allocation10] sm:$0x3] %v419_v0  ;;  %v480_v7 = vld [vmem:[#allocation2 + $0x6] sm:$0x3]  ;;  %v482_v8 = vld [vmem:[#allocation2 + $0xc] sm:$0x3]  ;;  %v70_v9 = vmax.f32 %v63_v4, %v64_v5 }
  0x2d   :  { %v484_v10 = vld [vmem:[#allocation2 + $0xe] sm:$0x3]  ;;  %v489_v13 = vmax.f32 %v71_v11, %v480_v7  ;;  %v506_v44 = vld [vmem:[#allocation5] sm:$0x3]  ;;  %v508_v45 = vld [vmem:[#allocation5 + $0x2] sm:$0x3] }
  0x2e   :  { %v72_v12 = vmax.f32 %v70_v9, %v482_v8  ;;  %vm115_vm0 = vcmp.eq.s32.totalorder %v506_v44, 0  ;;  %vm116_vm1 = vcmp.eq.s32.totalorder %v508_v45, 0  ;;  %vm138_vm2 = vcmp.eq.s32.totalorder %v506_v44, 1  ;;  %s420_s1 = smov [#allocation8]  }
  0x2f   :  { %v75_v15 = vsub.f32 %v59_v1, %v489_v13  ;;  %v81_v16 = vsub.f32 %v60_v2, %v489_v13  ;;  %v87_v17 = vsub.f32 %v478_v3, %v489_v13  ;;  %v93_v23 = vsub.f32 %v480_v7, %v489_v13  ;;  %s235_s14 = sshll.u32 %s420_s1, 4  ;;  %s552_s14 = int_to_ptr.vmem [resolvable:$true] %s235_s14 }
  0x30   :  { %v492_v14 = vmax.f32 %v72_v12, %v484_v10  ;;  %v119_v47 = vsel %vm115_vm0, %v59_v1, 0.0  ;;  %v120_v48 = vsel %vm116_vm1, %v63_v4, 0.0  ;;  %vm139_vm3 = vcmp.eq.s32.totalorder %v508_v45, 1  ;;  %s341_s15 = scalar_lea.vmem %s552_s14, 128  ;;  %p346_p3 = scmp.lt.s32.totalorder %s552_s14, %s552_s14 }
  0x31   :  { %v77_v21 = vmul.f32 1.442695, %v75_v15  ;;  %v83_v22 = vmul.f32 1.442695, %v81_v16  ;;  %v89_v27 = vmul.f32 1.442695, %v87_v17  ;;  %v142_v49 = vsel %vm138_vm2, %v60_v2, %v119_v47  ;;  %p342_p2 = scmp.ne.s32.totalorder %s552_s14, %s341_s15  ;;  %p347_p4 = scmp.lt.s32.totalorder %s341_s15, %s341_s15 }
  0x32   :  { %v76_v18 = vsub.f32 %v63_v4, %v492_v14  ;;  %v82_v19 = vsub.f32 %v64_v5, %v492_v14  ;;  %v88_v20 = vsub.f32 %v482_v8, %v492_v14  ;;  %v94_v26 = vsub.f32 %v484_v10, %v492_v14  ;;  %v178_v15 = vld [vmem:[#allocation8 + $0x4] sm:$0x3]  ;;  %v169_v47 = vld [vmem:[#allocation7 + $0x4] sm:$0x3] }
  0x33   :  { %273 = vpow2.f32 %v77_v21  ;;  %v95_v29 = vmul.f32 1.442695, %v93_v23  ;;  %v143_v50 = vsel %vm139_vm3, %v64_v5, %v120_v48  ;;  %vm162_vm4 = vcmp.eq.s32.totalorder %v506_v44, 2  ;;  %v154_v5 = vld [vmem:[#allocation8 + $0x2] sm:$0x3]  ;;  %p348_p5 = por %p347_p4, %p346_p3 }
  0x34   :  { %v79_v24 = vmul.f32 1.442695, %v76_v18  ;;  %v85_v25 = vmul.f32 1.442695, %v82_v19  ;;  %v91_v28 = vmul.f32 1.442695, %v88_v20  ;;  %v527_v52 = vsel %vm162_vm4, %v478_v3, %v142_v49 }
  0x35   :  { %v97_v30 = vmul.f32 1.442695, %v94_v26  ;;  %vm163_vm5 = vcmp.eq.s32.totalorder %v508_v45, 2  ;;  %vm186_vm7 = vcmp.eq.s32.totalorder %v506_v44, 3  ;;  %vm187_vm8 = vcmp.eq.s32.totalorder %v508_v45, 3  ;;  %p349_p6 = pnand %p348_p5, %p342_p2 }
  0x36   :  { %275 = vpow2.f32 %v79_v24  ;;  %v532_v53 = vsel %vm163_vm5, %v482_v8, %v143_v50  ;;  %v130_v3 = vld [vmem:[#allocation8] sm:$0x3]  ;;  %v202_v21 = vld [vmem:[#allocation8 + $0x6] sm:$0x3] }
  0x37   :  { %277 = vpow2.f32 %v83_v22 }
  0x38   :  { %279 = vpow2.f32 %v85_v25 }
  0x39   :  { %281 = vpow2.f32 %v89_v27 }
  0x3a   :  { %283 = vpow2.f32 %v91_v28 }
  0x3b   :  { %285 = vpow2.f32 %v95_v29 }
  0x3c   :  { %287 = vpow2.f32 %v97_v30 }
  0x3d   :  { %v274_v31 = vpop.eup %273 }
  0x40   :  { %v276_v32 = vpop.eup %275 }
  0x41   :  { %v278_v33 = vpop.eup %277 }
  0x42   :  { %v280_v34 = vpop.eup %279  ;;  %v99_v35 = vadd.f32 %v278_v33, %v274_v31 }
  0x43   :  { %v282_v36 = vpop.eup %281  ;;  %v100_v37 = vadd.f32 %v280_v34, %v276_v32 }
  0x44   :  { %v284_v38 = vpop.eup %283  ;;  %v101_v39 = vadd.f32 %v282_v36, %v99_v35 }
  0x45   :  { %v286_v40 = vpop.eup %285  ;;  %v102_v41 = vadd.f32 %v284_v38, %v100_v37 }
  0x46   :  { %v288_v42 = vpop.eup %287  ;;  %v103_v43 = vadd.f32 %v286_v40, %v101_v39 }
  0x47   :  { %v104_v46 = vadd.f32 %v288_v42, %v102_v41 }
  0x48   :  { %289 = vrcp.f32 %v103_v43 }
  0x49   :  { %291 = vrcp.f32 %v104_v46 }
  0x4a   :  { %293 = vlog2.f32 %v103_v43 }
  0x4b   :  { %295 = vlog2.f32 %v104_v46 }
  0x52   :  { %v290_v51 = vpop.eup %289 }
  0x53   :  { %v292_v54 = vpop.eup %291  ;;  %v117_v55 = vmul.f32 %v290_v51, %v274_v31  ;;  %v140_v56 = vmul.f32 %v290_v51, %v278_v33  ;;  %v164_v57 = vmul.f32 %v290_v51, %v282_v36  ;;  %v188_v58 = vmul.f32 %v290_v51, %v286_v40  ;;  %v121_v36 = vld [vmem:[#allocation7] sm:$0x3]  ;;  %v145_v40 = vld [vmem:[#allocation7 + $0x2] sm:$0x3] }
  0x54   :  { %v118_v59 = vmul.f32 %v292_v54, %v276_v32  ;;  %v141_v60 = vmul.f32 %v292_v54, %v280_v34  ;;  %v165_v61 = vmul.f32 %v292_v54, %v284_v38  ;;  %v189_v62 = vmul.f32 %v292_v54, %v288_v42  ;;  %v294_v31 = vpop.eup %293 }
  0x55   :  { %v131_v63 = vmul.f32 %v117_v55, %v117_v55  ;;  %v155_v0 = vmul.f32 %v140_v56, %v140_v56  ;;  %v179_v1 = vmul.f32 %v164_v57, %v164_v57  ;;  %v203_v2 = vmul.f32 %v188_v58, %v188_v58  ;;  %v296_v37 = vpop.eup %295 }
  0x56   :  { %v132_v4 = vmul.f32 %v118_v59, %v118_v59  ;;  %v156_v6 = vmul.f32 %v141_v60, %v141_v60  ;;  %v180_v8 = vmul.f32 %v165_v61, %v165_v61  ;;  %v204_v9 = vmul.f32 %v189_v62, %v189_v62 }
  0x57   :  { %v133_v11 = vsel %vm124_vm6, %v131_v63, 0.0  ;;  %v157_v12 = vsel %vm124_vm6, %v155_v0, 0.0  ;;  %v181_v16 = vsel %vm124_vm6, %v179_v1, 0.0  ;;  %v205_v17 = vsel %vm124_vm6, %v203_v2, 0.0 }
  0x58   :  { %v134_v18 = vsel %vm124_vm6, %v132_v4, 0.0  ;;  %v158_v19 = vsel %vm124_vm6, %v156_v6, 0.0  ;;  %v182_v20 = vsel %vm124_vm6, %v180_v8, 0.0  ;;  %v206_v22 = vsel %vm124_vm6, %v204_v9, 0.0 }
  0x59   :  { %v135_v23 = vadd.f32 %v134_v18, %v133_v11  ;;  %v159_v24 = vadd.f32 %v158_v19, %v157_v12  ;;  %v183_v25 = vadd.f32 %v182_v20, %v181_v16  ;;  %v207_v26 = vadd.f32 %v206_v22, %v205_v17 }
  0x5a   :  { %v122_v27 = vsel %vm115_vm0, %v117_v55, 0.0  ;;  %v123_v28 = vsel %vm116_vm1, %v118_v59, 0.0  ;;  %v146_v29 = vsel %vm138_vm2, %v140_v56, 0.0  ;;  %v147_v30 = vsel %vm139_vm3, %v141_v60, 0.0 }
  0x5b   :  { %v136_v32 = vadd.f32 %v135_v23, %v130_v3  ;;  %v160_v33 = vadd.f32 %v159_v24, %v154_v5  ;;  %v184_v34 = vadd.f32 %v183_v25, %v178_v15  ;;  %v208_v35 = vadd.f32 %v207_v26, %v202_v21 }
  0x5c   :  { %v125_v38 = vsel %vm124_vm6, %v122_v27, 0.0  ;;  %v126_v39 = vsel %vm124_vm6, %v123_v28, 0.0  ;;  %v148_v41 = vsel %vm124_vm6, %v146_v29, 0.0  ;;  %v149_v42 = vsel %vm124_vm6, %v147_v30, 0.0 }
  0x5d   :  { %137 = vst [vmem:[#allocation8] sm:$0x3] %v136_v32  ;;  %161 = vst [vmem:[#allocation8 + $0x2] sm:$0x3] %v160_v33  ;;  %v127_v43 = vadd.f32 %v126_v39, %v125_v38  ;;  %v150_v46 = vadd.f32 %v149_v42, %v148_v41  ;;  %v170_v48 = vsel %vm162_vm4, %v164_v57, 0.0  ;;  %v171_v49 = vsel %vm163_vm5, %v165_v61, 0.0 }
  0x5e   :  { %185 = vst [vmem:[#allocation8 + $0x4] sm:$0x3] %v184_v34  ;;  %209 = vst [vmem:[#allocation8 + $0x6] sm:$0x3] %v208_v35  ;;  %v172_v50 = vsel %vm124_vm6, %v170_v48, 0.0  ;;  %v173_v51 = vsel %vm124_vm6, %v171_v49, 0.0 }
  0x5f   :  { %v194_v54 = vsel %vm186_vm7, %v188_v58, 0.0  ;;  %v195_v55 = vsel %vm187_vm8, %v189_v62, 0.0 }
  0x60   :  { %352 = shalt.err (!%p349_p6)
}
  0x61   :  { %s353_s18 = scalar_lea.hbm %s632_s3, 128 }
  0x62   :  { %p354_p7 = scmp.ne.s32.totalorder %s632_s3, %s353_s18  ;;  %p357_p8 = scmp.lt.u32.totalorder %s353_s18, %s632_s3 }
  0x64   :  { %p359_p9 = pnand %p357_p8, %p354_p7 }
  0x66   :  { %362 = shalt.err (!%p359_p9)
}
  0x67   :  { %241 = dma.vmem_to_hbm [thread:$0]  %s552_s14, 128, %s632_s3, [#allocation9], %s416_s25, %s416_s25, %s417_s26   ;;  %v128_v56 = vadd.f32 %v127_v43, %v121_v36  ;;  %v151_v57 = vadd.f32 %v150_v46, %v145_v40  ;;  %v174_v58 = vadd.f32 %v173_v51, %v172_v50  ;;  %v193_v59 = vld [vmem:[#allocation7 + $0x6] sm:$0x3]  ;;  %v196_v60 = vsel %vm124_vm6, %v194_v54, 0.0 }
  0x68   :  { %v197_v61 = vsel %vm124_vm6, %v195_v55, 0.0  ;;  %v110_v62 = vmul.f32 0.6931472, %v294_v31  ;;  %v112_v63 = vmul.f32 0.6931472, %v296_v37  ;;  %s421_s27 = smov [#allocation7]   ;;  %v190_v2 = vsel %vm186_vm7, %v480_v7, %v527_v52 }
  0x69   :  { %s223_s28 = sshll.u32 %s421_s27, 4  ;;  %129 = vst [vmem:[#allocation7] sm:$0x3] %v128_v56  ;;  %152 = vst [vmem:[#allocation7 + $0x2] sm:$0x3] %v151_v57  ;;  %v175_v0 = vadd.f32 %v174_v58, %v169_v47  ;;  %v198_v1 = vadd.f32 %v197_v61, %v196_v60  ;;  %v191_v3 = vsel %vm187_vm8, %v484_v10, %v532_v53  ;;  %s422_s3 = smov [#allocation10]   ;;  %s224_s28 = int_to_ptr.vmem [resolvable:$true] %s223_s28 }
  0x6a   :  { %v113_v4 = vadd.f32 %v110_v62, %v489_v13  ;;  %v114_v5 = vadd.f32 %v112_v63, %v492_v14  ;;  %s248_s29 = sshll.u32 %s422_s3, 4  ;;  %v212_v11 = vld [vmem:[#allocation10] sm:$0x3]  ;;  %s363_s30 = scalar_lea.vmem %s224_s28, 128  ;;  %s249_s29 = int_to_ptr.vmem [resolvable:$true] %s248_s29 }
  0x6b   :  { %176 = vst [vmem:[#allocation7 + $0x4] sm:$0x3] %v175_v0  ;;  %v199_v6 = vadd.f32 %v198_v1, %v193_v59  ;;  %p364_p10 = scmp.ne.s32.totalorder %s224_s28, %s363_s30  ;;  %p368_p11 = scmp.lt.s32.totalorder %s224_s28, %s224_s28 }
  0x6c   :  { %v210_v8 = vsub.f32 %v113_v4, %v190_v2  ;;  %v211_v9 = vsub.f32 %v114_v5, %v191_v3  ;;  %p369_p12 = scmp.lt.s32.totalorder %s363_s30, %s363_s30 }
  0x6d   :  { %200 = vst [vmem:[#allocation7 + $0x6] sm:$0x3] %v199_v6 }
  0x6e   :  { %v213_v7 = vsel %vm124_vm6, %v210_v8, 0.0  ;;  %v214_v44 = vsel %vm124_vm6, %v211_v9, 0.0  ;;  %p370_p13 = por %p369_p12, %p368_p11 }
  0x70   :  { %p371_p0 = pnand %p370_p13, %p364_p10 }
  0x72   :  { %374 = shalt.err (!%p371_p0)
}
  0x73   :  { %s375_s7 = scalar_lea.hbm %s631_s2, 128 }
  0x74   :  { %p376_p1 = scmp.ne.s32.totalorder %s631_s2, %s375_s7  ;;  %p379_p2 = scmp.lt.u32.totalorder %s375_s7, %s631_s2 }
  0x76   :  { %p381_p3 = pnand %p379_p2, %p376_p1 }
  0x78   :  { %384 = shalt.err (!%p381_p3)
}
  0x79   :  { %229 = dma.vmem_to_hbm [thread:$0]  %s224_s28, 128, %s631_s2, [#allocation4], %s416_s25, %s416_s25, %s417_s26   ;;  %v215_v10 = vadd.f32 %v214_v44, %v213_v7 }
  0x7a   :  { %s385_s13 = scalar_lea.vmem %s249_s29, 32  ;;  %p390_p5 = scmp.lt.s32.totalorder %s249_s29, %s249_s29 }
  0x7b   :  { %v216_v13 = vadd.f32 %v215_v10, %v212_v11  ;;  %p386_p4 = scmp.ne.s32.totalorder %s249_s29, %s385_s13  ;;  %p391_p6 = scmp.lt.s32.totalorder %s385_s13, %s385_s13 }
  0x7d   :  { %217 = vst [vmem:[#allocation10] sm:$0x3] %v216_v13  ;;  %p392_p7 = por %p391_p6, %p390_p5 }
  0x7f   :  { %p393_p8 = pnand %p392_p7, %p386_p4 }
  0x81   :  { %396 = shalt.err (!%p393_p8)
}
  0x82   :  { %s397_s15 = scalar_lea.hbm %s633_s4, 32 }
  0x83   :  { %p398_p9 = scmp.ne.s32.totalorder %s633_s4, %s397_s15  ;;  %p401_p10 = scmp.lt.u32.totalorder %s397_s15, %s633_s4 }
  0x85   :  { %p403_p11 = pnand %p401_p10, %p398_p9 }
  0x87   :  { %406 = shalt.err (!%p403_p11)
}
  0x88   :  { %251 = dma.vmem_to_hbm [thread:$0]  %s249_s29, 32, %s633_s4, [#allocation9]  }
  0x89   :  { %411 = dma.done.wait [#allocation4], 128  }
  0x8a   :  { %412 = vsyncadd [#allocation4], 4294967168 }
  0x8b   :  { %413 = dma.done.wait [#allocation9], 160  }
  0x8c   :  { %414 = vsyncadd [#allocation9], 4294967136 }
  0x8d   :  { %261 = vsyncpa [#allocation3], 1 }
  0x8e   :  { %262 = vsyncpa [#allocation6], 1 }
  0x8f   :  { %263 = vsyncpa [#allocation4], 1 }
  0x90   :  { %264 = vsyncpa [#allocation9], 1 }

</bundles_post_ra>
